<compile_context>
chip_gen: v7x
topology: tpu7x:2x2x1
jax: 0.10.0
libtpu: 0.0.40
codegen_flags: <defaults>
</compile_context>

<pallas_src>
import jax
import jax.numpy as jnp
from jax import lax
from jax.experimental import pallas as pl
from jax.experimental.pallas import tpu as pltpu


def _round_up(x, m):
    return ((x + m - 1) // m) * m


def _lm_head_matmul_kernel(x_ref, w_ref, o_ref, acc_ref):
    """One (tm, tn) logits tile, accumulating over the K (hidden) grid axis.

    x_ref: (tm, tk) activations; w_ref: (tn, tk) weight (NOT transposed) --
    the contraction is over axis 1 of both operands.
    """
    @pl.when(pl.program_id(2) == 0)
    def _():
        acc_ref[...] = jnp.zeros_like(acc_ref)

    acc_ref[...] += lax.dot_general(
        x_ref[...],
        w_ref[...],
        dimension_numbers=(((1,), (1,)), ((), ())),
        preferred_element_type=jnp.float32,
    )

    @pl.when(pl.program_id(2) == pl.num_programs(2) - 1)
    def _():
        o_ref[...] = acc_ref[...].astype(o_ref.dtype)


def _vmem_budget_bytes():
    """Per-generation VMEM budget (headroom under physical capacity)."""
    try:
        cap = pltpu.get_tpu_info().vmem_capacity_bytes
    except Exception:
        cap = 64 << 20  # conservative fallback: v7x has 64 MiB / TensorCore
    return int(cap) * 3 // 4


def _tile_vmem_bytes(tm, tn, tk, in_itemsize, out_itemsize):
    return (2 * tm * tk * in_itemsize      # double-buffered activation tiles
            + 2 * tk * tn * in_itemsize    # double-buffered weight tiles
            + 2 * tm * tn * out_itemsize   # double-buffered output tiles
            + tm * tn * 4)                 # fp32 accumulator scratch


def _pick_tiles(M, K, V, in_itemsize, out_itemsize, budget):
    """Tiles big enough to sit near the HBM roofline, small enough for VMEM.

    Layout constraints: tm % 8 == 0, tn % 128 == 0, tk % 128 == 0."""
    tm = min(256, _round_up(M, 8))
    tn = min(512, _round_up(V, 128))
    tk = min(512, _round_up(K, 128))
    while _tile_vmem_bytes(tm, tn, tk, in_itemsize, out_itemsize) > budget and tn > 128:
        tn -= 128
    while _tile_vmem_bytes(tm, tn, tk, in_itemsize, out_itemsize) > budget and tk > 128:
        tk -= 128
    while _tile_vmem_bytes(tm, tn, tk, in_itemsize, out_itemsize) > budget and tm > 8:
        tm = max(8, tm // 2)
    return tm, tn, tk


def lm_head_matmul(x, w, *, tm, tn, tk, out_dtype, vmem_limit_bytes):
    """x: [M, K], w: [V, K]  ->  logits [M, V]  (contraction over K, fp32 acc)."""
    M, K = x.shape
    V, K2 = w.shape
    assert K == K2
    assert M % tm == 0 and V % tn == 0 and K % tk == 0

    flops = 2 * M * K * V
    bytes_accessed = int(
        M * K * jnp.dtype(x.dtype).itemsize
        + V * K * jnp.dtype(w.dtype).itemsize
        + M * V * jnp.dtype(out_dtype).itemsize
    )

    grid = (V // tn, M // tm, K // tk)  # vocab-tile outermost, reduction last
    return pl.pallas_call(
        _lm_head_matmul_kernel,
        out_shape=jax.ShapeDtypeStruct((M, V), out_dtype),
        grid_spec=pltpu.PrefetchScalarGridSpec(
            num_scalar_prefetch=0,
            grid=grid,
            in_specs=[
                pl.BlockSpec((tm, tk), lambda j, i, k: (i, k)),  # activations
                pl.BlockSpec((tn, tk), lambda j, i, k: (j, k)),  # weight [V, K]
            ],
            out_specs=pl.BlockSpec((tm, tn), lambda j, i, k: (i, j)),
            scratch_shapes=[pltpu.VMEM((tm, tn), jnp.float32)],
        ),
        compiler_params=pltpu.CompilerParams(
            dimension_semantics=("parallel", "parallel", "arbitrary"),
            vmem_limit_bytes=int(vmem_limit_bytes),
        ),
        cost_estimate=pl.CostEstimate(
            flops=flops, transcendentals=0, bytes_accessed=bytes_accessed
        ),
    )(x, w)


def llama_loss_forward(hidden_states, weight, *, compute_dtype=jnp.bfloat16,
                       out_dtype=None, tm=None, tn=None, tk=None):
    """JAX/Pallas equivalent of LlamaLoss_.forward (world_size == 1).

    hidden_states: [S, B, H]; weight: [V, H]; returns logits [S, B, V].
    """
    S, B, H = hidden_states.shape
    V, H2 = weight.shape
    assert H == H2
    if out_dtype is None:
        # Preserve the module's output dtype.  Pass out_dtype=bf16 (or fuse the
        # cross-entropy reduction) to halve / remove the dominant [M, V]
        # logits writeback.
        out_dtype = hidden_states.dtype

    M = S * B
    # bf16 operands + fp32 MXU accumulation: full MXU rate, half the HBM weight
    # stream.  Skip the cast if operands are already narrow (<= 16-bit).
    x2d = hidden_states.reshape(M, H)
    if jnp.dtype(x2d.dtype).itemsize > 2:
        x2d = x2d.astype(compute_dtype)
    w = weight
    if jnp.dtype(w.dtype).itemsize > 2:
        w = w.astype(compute_dtype)

    in_itemsize = jnp.dtype(x2d.dtype).itemsize
    out_itemsize = jnp.dtype(out_dtype).itemsize
    budget = _vmem_budget_bytes()
    tm_a, tn_a, tk_a = _pick_tiles(M, H, V, in_itemsize, out_itemsize, budget)
    tm = tm_a if tm is None else min(_round_up(tm, 8), _round_up(M, 8))
    tn = tn_a if tn is None else min(_round_up(tn, 128), _round_up(V, 128))
    tk = tk_a if tk is None else min(_round_up(tk, 128), _round_up(H, 128))

    # Zero-pad to tile multiples (zero K-padding is exact for the contraction).
    # TODO(synk): for real vocab sizes, pad the weight to a 256-multiple offline
    # (not per call), and fuse the log-softmax/cross-entropy into the last
    # k-step so full [M, V] logits never hit HBM.
    Mp, Kp, Vp = _round_up(M, tm), _round_up(H, tk), _round_up(V, tn)
    if (Mp, Kp) != (M, H):
        x2d = jnp.pad(x2d, ((0, Mp - M), (0, Kp - H)))
    if (Vp, Kp) != (V, H):
        w = jnp.pad(w, ((0, Vp - V), (0, Kp - H)))

    vmem_needed = _tile_vmem_bytes(tm, tn, tk, in_itemsize, out_itemsize)
    vmem_limit = min(budget, max(vmem_needed + (4 << 20), 32 << 20))

    logits2d = lm_head_matmul(x2d, w, tm=tm, tn=tn, tk=tk,
                              out_dtype=out_dtype, vmem_limit_bytes=vmem_limit)
    if (Mp, Vp) != (M, V):
        logits2d = logits2d[:M, :V]
    return logits2d.reshape(S, B, V)


# NOTE: sequence_parallel all-gather and the async tensor-parallel all-reduce
# are distributed-communication concerns; with world_size == 1 (this setting)
# the module reduces to the plain LM-head matmul above.
# TODO(synk): multi-device tensor-parallel all-gather / all-reduce path not
# implemented (would use make_async_remote_copy + barrier semaphores).

if __name__ == "__main__":
    # Small shapes consistent with the module: seq=8, batch=2, hidden=128, vocab=256.
    S, B, H, V = 8, 2, 128, 256
    key = jax.random.PRNGKey(0)
    k_x, k_w = jax.random.split(key)

    hidden_states = jax.random.normal(k_x, (S, B, H), dtype=jnp.float32)
    # Deterministic "parameter" init (stand-in for nn.Parameter(weight.clone())).
    weight = jax.random.normal(k_w, (V, H), dtype=jnp.float32) * 0.02

    logits = llama_loss_forward(hidden_states, weight)
    logits = jax.block_until_ready(logits)

    # Reference with the same bf16 operand rounding, fp32 accumulation
    # (matches the MXU bf16 x bf16 -> fp32 path).
    x_ref = hidden_states.astype(jnp.bfloat16).astype(jnp.float32)
    w_ref = weight.astype(jnp.bfloat16).astype(jnp.float32)
    ref = jnp.einsum("sbh,vh->sbv", x_ref, w_ref)
    assert logits.shape == (S, B, V)
    assert logits.dtype == hidden_states.dtype
    assert jnp.allclose(logits.astype(jnp.float32), ref, atol=2e-3, rtol=2e-3)

    # Ragged shapes (exercise the cdiv/padding path: H, V not tile multiples).
    S2, B2, H2, V2 = 3, 2, 96, 300
    k_x2, k_w2 = jax.random.split(jax.random.PRNGKey(0), 2)
    hs2 = jax.random.normal(k_x2, (S2, B2, H2), dtype=jnp.float32)
    w2 = jax.random.normal(k_w2, (V2, H2), dtype=jnp.float32) * 0.02
    logits2 = jax.block_until_ready(llama_loss_forward(hs2, w2))
    ref2 = jnp.einsum("sbh,vh->sbv",
                      hs2.astype(jnp.bfloat16).astype(jnp.float32),
                      w2.astype(jnp.bfloat16).astype(jnp.float32))
    assert logits2.shape == (S2, B2, V2)
    assert jnp.allclose(logits2.astype(jnp.float32), ref2, atol=2e-3, rtol=2e-3)

    print("KERNEL_OK")
</pallas_src>

<mosaic_0001>
module attributes {stable_mosaic.version = 11 : i64} {
  func.func @_lm_head_matmul_kernel(%arg0: i32, %arg1: i32, %arg2: i32, %arg3: memref<16x128xbf16, #tpu.memory_space<vmem>>, %arg4: memref<256x128xbf16, #tpu.memory_space<vmem>>, %arg5: memref<16x256xf32, #tpu.memory_space<vmem>>, %arg6: memref<16x256xf32, #tpu.memory_space<vmem>>) attributes {dimension_semantics = [#tpu.dimension_semantics<parallel>, #tpu.dimension_semantics<parallel>, #tpu.dimension_semantics<arbitrary>], iteration_bounds = array<i64: 1, 1, 1>, scalar_prefetch = 0 : i64, scratch_operands = 1 : i64, tpu.core_type = #tpu.core_type<tc>, window_params = [{transform_indices = @transform_0, window_bounds = array<i64: 16, 128>}, {transform_indices = @transform_1, window_bounds = array<i64: 256, 128>}, {transform_indices = @transform_2, window_bounds = array<i64: 16, 256>}]} {
    %c0_i32 = arith.constant 0 : i32
    %0 = arith.cmpi eq, %arg2, %c0_i32 : i32
    %1 = arith.extui %0 : i1 to i32
    %c0_i32_0 = arith.constant 0 : i32
    %2 = arith.cmpi ne, %1, %c0_i32_0 : i32
    scf.if %2 {
      %cst_10 = arith.constant 0.000000e+00 : f32
      %12 = vector.broadcast %cst_10 : f32 to vector<16x256xf32>
      %c0_11 = arith.constant 0 : index
      %c0_12 = arith.constant 0 : index
      %13 = vector.load %arg6[%c0_11, %c0_12] : memref<16x256xf32, #tpu.memory_space<vmem>>, vector<16x256xf32>
      tpu.vector_store %arg6[%c0_11, %c0_12], %12 {strides = array<i32>} : memref<16x256xf32, #tpu.memory_space<vmem>>, vector<16x256xf32>,
    } else {
    }
    %c0 = arith.constant 0 : index
    %c0_1 = arith.constant 0 : index
    %3 = vector.load %arg6[%c0, %c0_1] : memref<16x256xf32, #tpu.memory_space<vmem>>, vector<16x256xf32>
    %c0_2 = arith.constant 0 : index
    %c0_3 = arith.constant 0 : index
    %4 = vector.load %arg3[%c0_2, %c0_3] : memref<16x128xbf16, #tpu.memory_space<vmem>>, vector<16x128xbf16>
    %c0_4 = arith.constant 0 : index
    %c0_5 = arith.constant 0 : index
    %5 = vector.load %arg4[%c0_4, %c0_5] : memref<256x128xbf16, #tpu.memory_space<vmem>>, vector<256x128xbf16>
    %cst = arith.constant dense<0.000000e+00> : vector<16x256xf32>
    %6 = tpu.matmul %4, %5, %cst {dimension_numbers = #tpu.dot_dimension_numbers<[1], [1], [0], [0], [0, 0, 1, 0], [], []>} : vector<16x128xbf16>, vector<256x128xbf16>, vector<16x256xf32> -> vector<16x256xf32>
    %7 = arith.addf %3, %6 : vector<16x256xf32>
    %c0_6 = arith.constant 0 : index
    %c0_7 = arith.constant 0 : index
    %8 = vector.load %arg6[%c0_6, %c0_7] : memref<16x256xf32, #tpu.memory_space<vmem>>, vector<16x256xf32>
    tpu.vector_store %arg6[%c0_6, %c0_7], %7 {strides = array<i32>} : memref<16x256xf32, #tpu.memory_space<vmem>>, vector<16x256xf32>,
    %c0_i32_8 = arith.constant 0 : i32
    %9 = arith.cmpi eq, %arg2, %c0_i32_8 : i32
    %10 = arith.extui %9 : i1 to i32
    %c0_i32_9 = arith.constant 0 : i32
    %11 = arith.cmpi ne, %10, %c0_i32_9 : i32
    scf.if %11 {
      %c0_10 = arith.constant 0 : index
      %c0_11 = arith.constant 0 : index
      %12 = vector.load %arg6[%c0_10, %c0_11] : memref<16x256xf32, #tpu.memory_space<vmem>>, vector<16x256xf32>
      %c0_12 = arith.constant 0 : index
      %c0_13 = arith.constant 0 : index
      %13 = vector.load %arg5[%c0_12, %c0_13] : memref<16x256xf32, #tpu.memory_space<vmem>>, vector<16x256xf32>
      tpu.vector_store %arg5[%c0_12, %c0_13], %12 {strides = array<i32>} : memref<16x256xf32, #tpu.memory_space<vmem>>, vector<16x256xf32>,
    } else {
    }
    return
  }
  func.func @transform_0(%arg0: i32, %arg1: i32, %arg2: i32) -> (i32, i32) {
    %c0_i32 = arith.constant 0 : i32
    return %arg1, %arg2 : i32, i32
  }
  func.func @transform_1(%arg0: i32, %arg1: i32, %arg2: i32) -> (i32, i32) {
    %c0_i32 = arith.constant 0 : i32
    return %arg0, %arg2 : i32, i32
  }
  func.func @transform_2(%arg0: i32, %arg1: i32, %arg2: i32) -> (i32, i32) {
    %c0_i32 = arith.constant 0 : i32
    return %arg1, %arg0 : i32, i32
  }
}

</mosaic_0001>

<bundles_post_ra>
// kernel: tpu_custom_call.1
= control target key start
LH: loop header
LB: loop body
LE: loop exit
PB: predicated region body
PF: predicated region fallthrough
CT: control target
= control target key end

     0   :  { %7 = vsyncpa [#allocation4], 0  ;;  %s458_s0 = inlined_call_operand.hbm [shape: bf16[16,128], index: 0, kind: input, shape index: {}]   ;;  %s459_s1 = inlined_call_operand.hbm [shape: bf16[256,128], index: 1, kind: input, shape index: {}]   ;;  %s460_s2 = inlined_call_operand.hbm [shape: f32[16,256], index: 2, kind: output, shape index: {}]  }
   0x1   :  { %8 = vsyncpa [#allocation7], 0 }
   0x2   :  { %9 = vsyncpa [#allocation5], 0  ;;  %s400_s9 = smov [#allocation3]   ;;  %s328_s13 = scalar_lea.hbm %s458_s0, 128 }
   0x3   :  { %s15_s10 = sshll.u32 %s400_s9, 4  ;;  %p329_p0 = scmp.ne.s32.totalorder %s458_s0, %s328_s13  ;;  %s16_s10 = int_to_ptr.vmem [resolvable:$true] %s15_s10 }
   0x4   :  { %p332_p1 = scmp.lt.u32.totalorder %s328_s13, %s458_s0 }
   0x6   :  { %p334_p2 = pnand %p332_p1, %p329_p0 }
   0x8   :  { %337 = shalt.err (!%p334_p2)
}
   0x9   :  { %s338_s18 = scalar_lea.vmem %s16_s10, 128  ;;  %p343_p4 = scmp.lt.s32.totalorder %s16_s10, %s16_s10 }
   0xa   :  { %p339_p3 = scmp.ne.s32.totalorder %s16_s10, %s338_s18  ;;  %p344_p5 = scmp.lt.s32.totalorder %s338_s18, %s338_s18 }
   0xc   :  { %p345_p6 = por %p344_p5, %p343_p4 }
   0xe   :  { %p346_p7 = pnand %p345_p6, %p339_p3 }
  0x10   :  { %349 = shalt.err (!%p346_p7)
}
  0x11   :  { %s401_s19 = smov 64   ;;  %s402_s20 = smov 4  }
  0x12   :  { %21 = dma.hbm_to_vmem [thread:$0]  %s458_s0, 128, %s16_s10, [#allocation4], %s401_s19, %s401_s19, %s402_s20  }
  0x13   :  { %s403_s23 = smov [#allocation6]   ;;  %s350_s27 = scalar_lea.hbm %s459_s1, 2048 }
  0x14   :  { %s27_s24 = sshll.u32 %s403_s23, 4  ;;  %p351_p8 = scmp.ne.s32.totalorder %s459_s1, %s350_s27  ;;  %s28_s24 = int_to_ptr.vmem [resolvable:$true] %s27_s24 }
  0x15   :  { %p354_p9 = scmp.lt.u32.totalorder %s350_s27, %s459_s1 }
  0x17   :  { %p356_p10 = pnand %p354_p9, %p351_p8 }
  0x19   :  { %359 = shalt.err (!%p356_p10)
}
  0x1a   :  { %s360_s4 = scalar_lea.vmem %s28_s24, 2048  ;;  %p365_p12 = scmp.lt.s32.totalorder %s28_s24, %s28_s24 }
  0x1b   :  { %p361_p11 = scmp.ne.s32.totalorder %s28_s24, %s360_s4  ;;  %p366_p13 = scmp.lt.s32.totalorder %s360_s4, %s360_s4 }
  0x1d   :  { %p367_p0 = por %p366_p13, %p365_p12 }
  0x1f   :  { %p368_p1 = pnand %p367_p0, %p361_p11 }
  0x21   :  { %371 = shalt.err (!%p368_p1)
}
  0x22   :  { %33 = dma.hbm_to_vmem [thread:$0]  %s459_s1, 2048, %s28_s24, [#allocation7], %s401_s19, %s401_s19, %s402_s20  }
  0x23   :  { %394 = dma.done.wait [#allocation4], 128  }
  0x24   :  { %395 = vsyncadd [#allocation4], 4294967168 }
  0x25   :  { %396 = dma.done.wait [#allocation7], 2048  }
  0x26   :  { %397 = vsyncadd [#allocation7], 4294965248  ;;  %v311_v0 = vld [vmem:[#allocation6 + $0x40] sm:$0xff]   ;;  %v313_v2 = vld [vmem:[#allocation6 + $0x48] sm:$0xff]   ;;  %s404_s1 = smov [#allocation8]  }
  0x27   :  { %v312_v1 = vld [vmem:[#allocation6] sm:$0xff]   ;;  %286 = vmatprep.subr.bf16.mxu0 %v311_v0  ;;  %v314_v3 = vld [vmem:[#allocation6 + $0x8] sm:$0xff]   ;;  %v315_v4 = vld [vmem:[#allocation6 + $0x50] sm:$0xff]   ;;  %s256_s6 = sshll.u32 %s404_s1, 4  ;;  %s257_s6 = int_to_ptr.vmem [resolvable:$true] %s256_s6 }
  0x28   :  { %287 = vmatpush3.bf16.xpose.msra.mxu0 %v312_v1  ;;  %v316_v5 = vld [vmem:[#allocation6 + $0x10] sm:$0xff]   ;;  %v317_v6 = vld [vmem:[#allocation6 + $0x58] sm:$0xff]   ;;  %v319_v9 = vld [vmem:[#allocation6 + $0x60] sm:$0xff]   ;;  %s372_s7 = scalar_lea.vmem %s257_s6, 512  ;;  %p377_p3 = scmp.lt.s32.totalorder %s257_s6, %s257_s6 }
  0x29   :  { %288 = vmatprep.subr.bf16.mxu0 %v313_v2  ;;  %v327_v7 = vld [vmem:[#allocation3] sm:$0xff]   ;;  %v320_v10 = vld [vmem:[#allocation6 + $0x20] sm:$0xff]   ;;  %v321_v11 = vld [vmem:[#allocation6 + $0x68] sm:$0xff]   ;;  %p373_p2 = scmp.ne.s32.totalorder %s257_s6, %s372_s7  ;;  %p378_p4 = scmp.lt.s32.totalorder %s372_s7, %s372_s7 }
  0x2a   :  { %302 = vmatprep.mubr.bf16.mxu0 %v327_v7  ;;  %v318_v8 = vld [vmem:[#allocation6 + $0x18] sm:$0xff]   ;;  %v322_v12 = vld [vmem:[#allocation6 + $0x28] sm:$0xff]   ;;  %v323_v13 = vld [vmem:[#allocation6 + $0x70] sm:$0xff]  }
  0x2b   :  { %v324_v14 = vld [vmem:[#allocation6 + $0x30] sm:$0xff]   ;;  %v325_v15 = vld [vmem:[#allocation6 + $0x78] sm:$0xff]   ;;  %p379_p5 = por %p378_p4, %p377_p3 }
  0x2c   :  { %v326_v16 = vld [vmem:[#allocation6 + $0x38] sm:$0xff]  }
  0x2d   :  { %p380_p6 = pnand %p379_p5, %p373_p2 }
  0x30   :  { %289 = vmatpush3.bf16.xpose.msra.mxu0 %v314_v3 }
  0x31   :  { %290 = vmatprep.subr.bf16.mxu0 %v315_v4 }
  0x38   :  { %291 = vmatpush3.bf16.xpose.msra.mxu0 %v316_v5 }
  0x39   :  { %292 = vmatprep.subr.bf16.mxu0 %v317_v6 }
  0x40   :  { %293 = vmatpush3.bf16.xpose.msra.mxu0 %v318_v8 }
  0x41   :  { %294 = vmatprep.subr.bf16.mxu0 %v319_v9 }
  0x48   :  { %295 = vmatpush3.bf16.xpose.msra.mxu0 %v320_v10 }
  0x49   :  { %296 = vmatprep.subr.bf16.mxu0 %v321_v11 }
  0x50   :  { %297 = vmatpush3.bf16.xpose.msra.mxu0 %v322_v12 }
  0x51   :  { %298 = vmatprep.subr.bf16.mxu0 %v323_v13 }
  0x58   :  { %299 = vmatpush3.bf16.xpose.msra.mxu0 %v324_v14 }
  0x59   :  { %300 = vmatprep.subr.bf16.mxu0 %v325_v15 }
  0x60   :  { %301 = vmatpush3.bf16.xpose.msra.mxu0 %v326_v16 }
  0x67   :  { %303 = vmatmul.mubr.bf16.vlgmr.msra.gmra.mrb[0].mxu0 %v327_v7 }
 0x13a   :  { %v223_v17 = vpop.f32.mrb[0].mxu0 }
 0x13b   :  { %247 = vst [vmem:[#allocation8] sm:$0xff] %v223_v17  ;;  %v225_v18 = vpop.f32.mrb[1].mxu0 }
 0x13c   :  { %248 = vst [vmem:[#allocation8 + $0x8] sm:$0xff] %v225_v18  ;;  %v227_v19 = vpop.f32.mrb[2].mxu0 }
 0x13d   :  { %249 = vst [vmem:[#allocation8 + $0x10] sm:$0xff] %v227_v19  ;;  %v229_v20 = vpop.f32.mrb[3].mxu0 }
 0x13e   :  { %250 = vst [vmem:[#allocation8 + $0x18] sm:$0xff] %v229_v20 }
 0x13f   :  { %383 = shalt.err (!%p380_p6)
}
 0x140   :  { %s384_s10 = scalar_lea.hbm %s460_s2, 512 }
 0x141   :  { %p385_p7 = scmp.ne.s32.totalorder %s460_s2, %s384_s10  ;;  %p388_p8 = scmp.lt.u32.totalorder %s384_s10, %s460_s2 }
 0x143   :  { %p390_p9 = pnand %p388_p8, %p385_p7 }
 0x145   :  { %393 = shalt.err (!%p390_p9)
}
 0x146   :  { %s405_s15 = smov 256   ;;  %s406_s16 = smov 16  }
 0x147   :  { %262 = dma.vmem_to_hbm [thread:$0]  %s257_s6, 512, %s460_s2, [#allocation5], %s405_s15, %s405_s15, %s406_s16  }
 0x148   :  { %398 = dma.done.wait [#allocation5], 512  }
 0x149   :  { %399 = vsyncadd [#allocation5], 4294966784 }
 0x14a   :  { %266 = vsyncpa [#allocation4], 1 }
 0x14b   :  { %267 = vsyncpa [#allocation7], 1 }
 0x14c   :  { %268 = vsyncpa [#allocation5], 1 }

</bundles_post_ra>
